<compile_context>
chip_gen: v7x
topology: tpu7x:2x2x1
jax: 0.10.0
libtpu: 0.0.40
codegen_flags: <defaults>
</compile_context>

<pallas_src>
import jax
import jax.numpy as jnp
from jax import lax
from jax.experimental import pallas as pl
from jax.experimental.pallas import tpu as pltpu


def _make_kernel(T, B, H):
    def kernel(x_ref, wih_ref, whh_ref, b_ref,
               gamma_ref, beta_ref, dw_ref, db_ref,
               out_ref, xp_sc, h_sc):
        # ---- Phase 1: batched input projection (not on the serial path) ----
        # (T*B, D) @ (D, 4H) + (1, 4H) -> (T*B, 4H), one lane-dense matmul.
        xp_sc[...] = (jnp.dot(x_ref[...], wih_ref[...],
                              preferred_element_type=jnp.float32)
                      + b_ref[...])

        whh = whh_ref[...]   # (H, 4H); loop-invariant load hoisted out of loop

        # ---- Phase 2: serial LSTM recurrence (only h @ W_hh per step) ----
        def step(t, carry):
            h_prev, c_prev = carry
            row = pl.multiple_of(t * B, B)
            gates = (xp_sc[pl.ds(row, B), :]
                     + jnp.dot(h_prev, whh,
                               preferred_element_type=jnp.float32))   # (B, 4H)
            # PyTorch LSTM gate order along 4H: i, f, g, o (static lane slices)
            i_g = jax.nn.sigmoid(gates[:, 0:H])
            f_g = jax.nn.sigmoid(gates[:, H:2 * H])
            g_g = jnp.tanh(gates[:, 2 * H:3 * H])
            o_g = jax.nn.sigmoid(gates[:, 3 * H:4 * H])
            c_new = f_g * c_prev + i_g * g_g
            h_new = o_g * jnp.tanh(c_new)
            h_sc[pl.ds(row, B), :] = h_new
            return h_new, c_new

        zeros = jnp.zeros((B, H), jnp.float32)
        lax.fori_loop(0, T, step, (zeros, zeros), unroll=True)

        # ---- Phase 3: batched tanh -> LayerNorm -> dense -> softmax ----
        a = jnp.tanh(h_sc[...])                                 # (T*B, H)
        mu = jnp.mean(a, axis=-1, keepdims=True)
        var = jnp.mean((a - mu) ** 2, axis=-1, keepdims=True)
        y = (a - mu) * lax.rsqrt(var + 1e-5) * gamma_ref[...] + beta_ref[...]
        logits = (jnp.dot(y, dw_ref[...],
                          preferred_element_type=jnp.float32)
                  + db_ref[...])                                # (T*B, O)
        m = jnp.max(logits, axis=-1, keepdims=True)
        e = jnp.exp(logits - m)
        out_ref[...] = (e / jnp.sum(e, axis=-1, keepdims=True)).astype(out_ref.dtype)

    return kernel


def enhanced_recurrent_forward(x, params):
    """x: (B, T, D) batch-first, as in the torch module. Returns (B, T, O)."""
    B, T, D = x.shape
    H = params["gamma"].shape[-1]
    O = params["dense_w"].shape[-1]

    # Time-major and flattened to rows so every in-kernel matmul is plain 2-D.
    x2d = jnp.transpose(x, (1, 0, 2)).reshape(T * B, D).astype(jnp.float32)

    def vmem_spec():
        return pl.BlockSpec(memory_space=pltpu.MemorySpace.VMEM)

    out2d = pl.pallas_call(
        _make_kernel(T, B, H),
        out_shape=jax.ShapeDtypeStruct((T * B, O), jnp.float32),
        in_specs=[vmem_spec() for _ in range(8)],   # whole arrays resident in VMEM
        out_specs=vmem_spec(),
        scratch_shapes=[
            pltpu.VMEM((T * B, 4 * H), jnp.float32),   # hoisted x-projection
            pltpu.VMEM((T * B, H), jnp.float32),       # all hidden states h_t
        ],
    )(x2d, params["w_ih"], params["w_hh"], params["b"],
      params["gamma"], params["beta"], params["dense_w"], params["dense_b"])

    return jnp.transpose(out2d.reshape(T, B, O), (1, 0, 2))   # (B, T, O)


def reference_forward(x, params):
    """Pure-JAX reference (scan LSTM) mirroring the PyTorch forward."""
    B, T, D = x.shape
    H = params["gamma"].shape[-1]

    def cell(carry, x_t):
        h, c = carry
        gates = (x_t @ params["w_ih"] + params["b"]) + h @ params["w_hh"]
        i = jax.nn.sigmoid(gates[:, 0:H])
        f = jax.nn.sigmoid(gates[:, H:2 * H])
        g_ = jnp.tanh(gates[:, 2 * H:3 * H])
        o = jax.nn.sigmoid(gates[:, 3 * H:4 * H])
        c = f * c + i * g_
        h = o * jnp.tanh(c)
        return (h, c), h

    x_tm = jnp.transpose(x, (1, 0, 2))
    _, hs = lax.scan(cell, (jnp.zeros((B, H), jnp.float32),
                            jnp.zeros((B, H), jnp.float32)), x_tm)  # (T, B, H)
    a = jnp.tanh(hs)
    mu = a.mean(-1, keepdims=True)
    var = ((a - mu) ** 2).mean(-1, keepdims=True)
    y = (a - mu) / jnp.sqrt(var + 1e-5) * params["gamma"] + params["beta"]
    logits = y @ params["dense_w"] + params["dense_b"]
    probs = jax.nn.softmax(logits, axis=-1)
    return jnp.transpose(probs, (1, 0, 2))


def init_params(key, input_dim, hidden_dim, output_dim):
    """Deterministic synthetic init matching the module's parameter shapes.
    LSTM weights are stored FUSED along the gate axis (order i, f, g, o) and
    pre-transposed to (in, 4H); b = b_ih + b_hh. LayerNorm gamma=1, beta=0."""
    k1, k2, k3, k4, k5 = jax.random.split(key, 5)
    kH = 1.0 / jnp.sqrt(hidden_dim)
    return {
        "w_ih": jax.random.uniform(k1, (input_dim, 4 * hidden_dim), jnp.float32, -kH, kH),
        "w_hh": jax.random.uniform(k2, (hidden_dim, 4 * hidden_dim), jnp.float32, -kH, kH),
        "b":    jax.random.uniform(k3, (1, 4 * hidden_dim), jnp.float32, -2 * kH, 2 * kH),
        "gamma": jnp.ones((1, hidden_dim), jnp.float32),
        "beta":  jnp.zeros((1, hidden_dim), jnp.float32),
        # nn.Linear(hidden_dim, output_dim), stored transposed as (H, O)
        "dense_w": jax.random.uniform(k4, (hidden_dim, output_dim), jnp.float32, -kH, kH),
        "dense_b": jax.random.uniform(k5, (1, output_dim), jnp.float32, -kH, kH),
    }


if __name__ == "__main__":
    B, T, D, H, O = 2, 8, 16, 32, 29

    key = jax.random.PRNGKey(0)
    kx, kp = jax.random.split(key)
    x = jax.random.normal(kx, (B, T, D), jnp.float32)
    params = init_params(kp, D, H, O)

    out = enhanced_recurrent_forward(x, params)
    out = jax.block_until_ready(out)

    ref = reference_forward(x, params)
    assert out.shape == (B, T, O), out.shape
    assert jnp.allclose(out, ref, atol=2e-5, rtol=2e-5), (
        float(jnp.max(jnp.abs(out - ref))))

    print("KERNEL_OK")
</pallas_src>

<mosaic_0001>
module attributes {stable_mosaic.version = 11 : i64} {
  func.func @kernel(%arg0: memref<16x16xf32, #tpu.memory_space<vmem>>, %arg1: memref<16x128xf32, #tpu.memory_space<vmem>>, %arg2: memref<32x128xf32, #tpu.memory_space<vmem>>, %arg3: memref<1x128xf32, #tpu.memory_space<vmem>>, %arg4: memref<1x32xf32, #tpu.memory_space<vmem>>, %arg5: memref<1x32xf32, #tpu.memory_space<vmem>>, %arg6: memref<32x29xf32, #tpu.memory_space<vmem>>, %arg7: memref<1x29xf32, #tpu.memory_space<vmem>>, %arg8: memref<16x29xf32, #tpu.memory_space<vmem>>, %arg9: memref<16x128xf32, #tpu.memory_space<vmem>>, %arg10: memref<16x32xf32, #tpu.memory_space<vmem>>) attributes {dimension_semantics = [], scalar_prefetch = 0 : i64, scratch_operands = 2 : i64, tpu.core_type = #tpu.core_type<tc>} {
    %c0 = arith.constant 0 : index
    %c0_0 = arith.constant 0 : index
    %0 = vector.load %arg0[%c0, %c0_0] : memref<16x16xf32, #tpu.memory_space<vmem>>, vector<16x16xf32>
    %c0_1 = arith.constant 0 : index
    %c0_2 = arith.constant 0 : index
    %1 = vector.load %arg1[%c0_1, %c0_2] : memref<16x128xf32, #tpu.memory_space<vmem>>, vector<16x128xf32>
    %cst = arith.constant dense<0.000000e+00> : vector<16x128xf32>
    %2 = tpu.matmul %0, %1, %cst {dimension_numbers = #tpu.dot_dimension_numbers<[1], [0], [0], [1], [0, 0, 1, 1], [], []>} : vector<16x16xf32>, vector<16x128xf32>, vector<16x128xf32> -> vector<16x128xf32>
    %c0_3 = arith.constant 0 : index
    %c0_4 = arith.constant 0 : index
    %3 = vector.load %arg3[%c0_3, %c0_4] : memref<1x128xf32, #tpu.memory_space<vmem>>, vector<1x128xf32>
    %4 = vector.broadcast %3 : vector<1x128xf32> to vector<16x128xf32>
    %5 = arith.addf %2, %4 : vector<16x128xf32>
    %c0_5 = arith.constant 0 : index
    %c0_6 = arith.constant 0 : index
    %6 = vector.load %arg9[%c0_5, %c0_6] : memref<16x128xf32, #tpu.memory_space<vmem>>, vector<16x128xf32>
    tpu.vector_store %arg9[%c0_5, %c0_6], %5 {strides = array<i32>} : memref<16x128xf32, #tpu.memory_space<vmem>>, vector<16x128xf32>,
    %c0_7 = arith.constant 0 : index
    %c0_8 = arith.constant 0 : index
    %7 = vector.load %arg2[%c0_7, %c0_8] : memref<32x128xf32, #tpu.memory_space<vmem>>, vector<32x128xf32>
    %cst_9 = arith.constant 0.000000e+00 : f32
    %8 = vector.broadcast %cst_9 : f32 to vector<2x32xf32>
    %c0_i32 = arith.constant 0 : i32
    %c2_i32 = arith.constant 2 : i32
    %9 = arith.muli %c0_i32, %c2_i32 : i32
    %10 = tpu.assume_multiple %9, 2 : i32
    %11 = arith.index_cast %10 : i32 to index
    %c0_10 = arith.constant 0 : index
    %12 = vector.load %arg9[%11, %c0_10] : memref<16x128xf32, #tpu.memory_space<vmem>>, vector<2x128xf32>
    %cst_11 = arith.constant dense<0.000000e+00> : vector<2x128xf32>
    %13 = tpu.matmul %8, %7, %cst_11 {dimension_numbers = #tpu.dot_dimension_numbers<[1], [0], [0], [1], [0, 0, 1, 1], [], []>} : vector<2x32xf32>, vector<32x128xf32>, vector<2x128xf32> -> vector<2x128xf32>
    %14 = arith.addf %12, %13 : vector<2x128xf32>
    %15 = vector.extract_strided_slice %14 {offsets = [0, 0], sizes = [2, 32], strides = [1, 1]} : vector<2x128xf32> to vector<2x32xf32>
    %16 = arith.negf %15 : vector<2x32xf32>
    %17 = math.exp %16 : vector<2x32xf32>
    %cst_12 = arith.constant 1.000000e+00 : f32
    %18 = vector.broadcast %cst_12 : f32 to vector<2x32xf32>
    %19 = arith.addf %18, %17 : vector<2x32xf32>
    %20 = arith.divf %18, %19 : vector<2x32xf32>
    %21 = vector.extract_strided_slice %14 {offsets = [0, 32], sizes = [2, 32], strides = [1, 1]} : vector<2x128xf32> to vector<2x32xf32>
    %22 = arith.negf %21 : vector<2x32xf32>
    %23 = math.exp %22 : vector<2x32xf32>
    %cst_13 = arith.constant 1.000000e+00 : f32
    %24 = vector.broadcast %cst_13 : f32 to vector<2x32xf32>
    %25 = arith.addf %24, %23 : vector<2x32xf32>
    %26 = arith.divf %24, %25 : vector<2x32xf32>
    %27 = vector.extract_strided_slice %14 {offsets = [0, 64], sizes = [2, 32], strides = [1, 1]} : vector<2x128xf32> to vector<2x32xf32>
    %28 = math.tanh %27 : vector<2x32xf32>
    %29 = vector.extract_strided_slice %14 {offsets = [0, 96], sizes = [2, 32], strides = [1, 1]} : vector<2x128xf32> to vector<2x32xf32>
    %30 = arith.negf %29 : vector<2x32xf32>
    %31 = math.exp %30 : vector<2x32xf32>
    %cst_14 = arith.constant 1.000000e+00 : f32
    %32 = vector.broadcast %cst_14 : f32 to vector<2x32xf32>
    %33 = arith.addf %32, %31 : vector<2x32xf32>
    %34 = arith.divf %32, %33 : vector<2x32xf32>
    %35 = arith.mulf %26, %8 : vector<2x32xf32>
    %36 = arith.mulf %20, %28 : vector<2x32xf32>
    %37 = arith.addf %35, %36 : vector<2x32xf32>
    %38 = math.tanh %37 : vector<2x32xf32>
    %39 = arith.mulf %34, %38 : vector<2x32xf32>
    %40 = arith.index_cast %10 : i32 to index
    %c0_15 = arith.constant 0 : index
    %41 = vector.load %arg10[%40, %c0_15] : memref<16x32xf32, #tpu.memory_space<vmem>>, vector<2x32xf32>
    tpu.vector_store %arg10[%40, %c0_15], %39 {strides = array<i32>} : memref<16x32xf32, #tpu.memory_space<vmem>>, vector<2x32xf32>,
    %c1_i32 = arith.constant 1 : i32
    %c2_i32_16 = arith.constant 2 : i32
    %42 = arith.muli %c1_i32, %c2_i32_16 : i32
    %43 = tpu.assume_multiple %42, 2 : i32
    %44 = arith.index_cast %43 : i32 to index
    %c0_17 = arith.constant 0 : index
    %45 = vector.load %arg9[%44, %c0_17] : memref<16x128xf32, #tpu.memory_space<vmem>>, vector<2x128xf32>
    %cst_18 = arith.constant dense<0.000000e+00> : vector<2x128xf32>
    %46 = tpu.matmul %39, %7, %cst_18 {dimension_numbers = #tpu.dot_dimension_numbers<[1], [0], [0], [1], [0, 0, 1, 1], [], []>} : vector<2x32xf32>, vector<32x128xf32>, vector<2x128xf32> -> vector<2x128xf32>
    %47 = arith.addf %45, %46 : vector<2x128xf32>
    %48 = vector.extract_strided_slice %47 {offsets = [0, 0], sizes = [2, 32], strides = [1, 1]} : vector<2x128xf32> to vector<2x32xf32>
    %49 = arith.negf %48 : vector<2x32xf32>
    %50 = math.exp %49 : vector<2x32xf32>
    %cst_19 = arith.constant 1.000000e+00 : f32
    %51 = vector.broadcast %cst_19 : f32 to vector<2x32xf32>
    %52 = arith.addf %51, %50 : vector<2x32xf32>
    %53 = arith.divf %51, %52 : vector<2x32xf32>
    %54 = vector.extract_strided_slice %47 {offsets = [0, 32], sizes = [2, 32], strides = [1, 1]} : vector<2x128xf32> to vector<2x32xf32>
    %55 = arith.negf %54 : vector<2x32xf32>
    %56 = math.exp %55 : vector<2x32xf32>
    %cst_20 = arith.constant 1.000000e+00 : f32
    %57 = vector.broadcast %cst_20 : f32 to vector<2x32xf32>
    %58 = arith.addf %57, %56 : vector<2x32xf32>
    %59 = arith.divf %57, %58 : vector<2x32xf32>
    %60 = vector.extract_strided_slice %47 {offsets = [0, 64], sizes = [2, 32], strides = [1, 1]} : vector<2x128xf32> to vector<2x32xf32>
    %61 = math.tanh %60 : vector<2x32xf32>
    %62 = vector.extract_strided_slice %47 {offsets = [0, 96], sizes = [2, 32], strides = [1, 1]} : vector<2x128xf32> to vector<2x32xf32>
    %63 = arith.negf %62 : vector<2x32xf32>
    %64 = math.exp %63 : vector<2x32xf32>
    %cst_21 = arith.constant 1.000000e+00 : f32
    %65 = vector.broadcast %cst_21 : f32 to vector<2x32xf32>
    %66 = arith.addf %65, %64 : vector<2x32xf32>
    %67 = arith.divf %65, %66 : vector<2x32xf32>
    %68 = arith.mulf %59, %37 : vector<2x32xf32>
    %69 = arith.mulf %53, %61 : vector<2x32xf32>
    %70 = arith.addf %68, %69 : vector<2x32xf32>
    %71 = math.tanh %70 : vector<2x32xf32>
    %72 = arith.mulf %67, %71 : vector<2x32xf32>
    %73 = arith.index_cast %43 : i32 to index
    %c0_22 = arith.constant 0 : index
    %74 = vector.load %arg10[%73, %c0_22] : memref<16x32xf32, #tpu.memory_space<vmem>>, vector<2x32xf32>
    tpu.vector_store %arg10[%73, %c0_22], %72 {strides = array<i32>} : memref<16x32xf32, #tpu.memory_space<vmem>>, vector<2x32xf32>,
    %c2_i32_23 = arith.constant 2 : i32
    %c2_i32_24 = arith.constant 2 : i32
    %75 = arith.muli %c2_i32_23, %c2_i32_24 : i32
    %76 = tpu.assume_multiple %75, 2 : i32
    %77 = arith.index_cast %76 : i32 to index
    %c0_25 = arith.constant 0 : index
    %78 = vector.load %arg9[%77, %c0_25] : memref<16x128xf32, #tpu.memory_space<vmem>>, vector<2x128xf32>
    %cst_26 = arith.constant dense<0.000000e+00> : vector<2x128xf32>
    %79 = tpu.matmul %72, %7, %cst_26 {dimension_numbers = #tpu.dot_dimension_numbers<[1], [0], [0], [1], [0, 0, 1, 1], [], []>} : vector<2x32xf32>, vector<32x128xf32>, vector<2x128xf32> -> vector<2x128xf32>
    %80 = arith.addf %78, %79 : vector<2x128xf32>
    %81 = vector.extract_strided_slice %80 {offsets = [0, 0], sizes = [2, 32], strides = [1, 1]} : vector<2x128xf32> to vector<2x32xf32>
    %82 = arith.negf %81 : vector<2x32xf32>
    %83 = math.exp %82 : vector<2x32xf32>
    %cst_27 = arith.constant 1.000000e+00 : f32
    %84 = vector.broadcast %cst_27 : f32 to vector<2x32xf32>
    %85 = arith.addf %84, %83 : vector<2x32xf32>
    %86 = arith.divf %84, %85 : vector<2x32xf32>
    %87 = vector.extract_strided_slice %80 {offsets = [0, 32], sizes = [2, 32], strides = [1, 1]} : vector<2x128xf32> to vector<2x32xf32>
    %88 = arith.negf %87 : vector<2x32xf32>
    %89 = math.exp %88 : vector<2x32xf32>
    %cst_28 = arith.constant 1.000000e+00 : f32
    %90 = vector.broadcast %cst_28 : f32 to vector<2x32xf32>
    %91 = arith.addf %90, %89 : vector<2x32xf32>
    %92 = arith.divf %90, %91 : vector<2x32xf32>
    %93 = vector.extract_strided_slice %80 {offsets = [0, 64], sizes = [2, 32], strides = [1, 1]} : vector<2x128xf32> to vector<2x32xf32>
    %94 = math.tanh %93 : vector<2x32xf32>
    %95 = vector.extract_strided_slice %80 {offsets = [0, 96], sizes = [2, 32], strides = [1, 1]} : vector<2x128xf32> to vector<2x32xf32>
    %96 = arith.negf %95 : vector<2x32xf32>
    %97 = math.exp %96 : vector<2x32xf32>
    %cst_29 = arith.constant 1.000000e+00 : f32
    %98 = vector.broadcast %cst_29 : f32 to vector<2x32xf32>
    %99 = arith.addf %98, %97 : vector<2x32xf32>
    %100 = arith.divf %98, %99 : vector<2x32xf32>
    %101 = arith.mulf %92, %70 : vector<2x32xf32>
    %102 = arith.mulf %86, %94 : vector<2x32xf32>
    %103 = arith.addf %101, %102 : vector<2x32xf32>
    %104 = math.tanh %103 : vector<2x32xf32>
    %105 = arith.mulf %100, %104 : vector<2x32xf32>
    %106 = arith.index_cast %76 : i32 to index
    %c0_30 = arith.constant 0 : index
    %107 = vector.load %arg10[%106, %c0_30] : memref<16x32xf32, #tpu.memory_space<vmem>>, vector<2x32xf32>
    tpu.vector_store %arg10[%106, %c0_30], %105 {strides = array<i32>} : memref<16x32xf32, #tpu.memory_space<vmem>>, vector<2x32xf32>,
    %c3_i32 = arith.constant 3 : i32
    %c2_i32_31 = arith.constant 2 : i32
    %108 = arith.muli %c3_i32, %c2_i32_31 : i32
    %109 = tpu.assume_multiple %108, 2 : i32
    %110 = arith.index_cast %109 : i32 to index
    %c0_32 = arith.constant 0 : index
    %111 = vector.load %arg9[%110, %c0_32] : memref<16x128xf32, #tpu.memory_space<vmem>>, vector<2x128xf32>
    %cst_33 = arith.constant dense<0.000000e+00> : vector<2x128xf32>
    %112 = tpu.matmul %105, %7, %cst_33 {dimension_numbers = #tpu.dot_dimension_numbers<[1], [0], [0], [1], [0, 0, 1, 1], [], []>} : vector<2x32xf32>, vector<32x128xf32>, vector<2x128xf32> -> vector<2x128xf32>
    %113 = arith.addf %111, %112 : vector<2x128xf32>
    %114 = vector.extract_strided_slice %113 {offsets = [0, 0], sizes = [2, 32], strides = [1, 1]} : vector<2x128xf32> to vector<2x32xf32>
    %115 = arith.negf %114 : vector<2x32xf32>
    %116 = math.exp %115 : vector<2x32xf32>
    %cst_34 = arith.constant 1.000000e+00 : f32
    %117 = vector.broadcast %cst_34 : f32 to vector<2x32xf32>
    %118 = arith.addf %117, %116 : vector<2x32xf32>
    %119 = arith.divf %117, %118 : vector<2x32xf32>
    %120 = vector.extract_strided_slice %113 {offsets = [0, 32], sizes = [2, 32], strides = [1, 1]} : vector<2x128xf32> to vector<2x32xf32>
    %121 = arith.negf %120 : vector<2x32xf32>
    %122 = math.exp %121 : vector<2x32xf32>
    %cst_35 = arith.constant 1.000000e+00 : f32
    %123 = vector.broadcast %cst_35 : f32 to vector<2x32xf32>
    %124 = arith.addf %123, %122 : vector<2x32xf32>
    %125 = arith.divf %123, %124 : vector<2x32xf32>
    %126 = vector.extract_strided_slice %113 {offsets = [0, 64], sizes = [2, 32], strides = [1, 1]} : vector<2x128xf32> to vector<2x32xf32>
    %127 = math.tanh %126 : vector<2x32xf32>
    %128 = vector.extract_strided_slice %113 {offsets = [0, 96], sizes = [2, 32], strides = [1, 1]} : vector<2x128xf32> to vector<2x32xf32>
    %129 = arith.negf %128 : vector<2x32xf32>
    %130 = math.exp %129 : vector<2x32xf32>
    %cst_36 = arith.constant 1.000000e+00 : f32
    %131 = vector.broadcast %cst_36 : f32 to vector<2x32xf32>
    %132 = arith.addf %131, %130 : vector<2x32xf32>
    %133 = arith.divf %131, %132 : vector<2x32xf32>
    %134 = arith.mulf %125, %103 : vector<2x32xf32>
    %135 = arith.mulf %119, %127 : vector<2x32xf32>
    %136 = arith.addf %134, %135 : vector<2x32xf32>
    %137 = math.tanh %136 : vector<2x32xf32>
    %138 = arith.mulf %133, %137 : vector<2x32xf32>
    %139 = arith.index_cast %109 : i32 to index
    %c0_37 = arith.constant 0 : index
    %140 = vector.load %arg10[%139, %c0_37] : memref<16x32xf32, #tpu.memory_space<vmem>>, vector<2x32xf32>
    tpu.vector_store %arg10[%139, %c0_37], %138 {strides = array<i32>} : memref<16x32xf32, #tpu.memory_space<vmem>>, vector<2x32xf32>,
    %c4_i32 = arith.constant 4 : i32
    %c2_i32_38 = arith.constant 2 : i32
    %141 = arith.muli %c4_i32, %c2_i32_38 : i32
    %142 = tpu.assume_multiple %141, 2 : i32
    %143 = arith.index_cast %142 : i32 to index
    %c0_39 = arith.constant 0 : index
    %144 = vector.load %arg9[%143, %c0_39] : memref<16x128xf32, #tpu.memory_space<vmem>>, vector<2x128xf32>
    %cst_40 = arith.constant dense<0.000000e+00> : vector<2x128xf32>
    %145 = tpu.matmul %138, %7, %cst_40 {dimension_numbers = #tpu.dot_dimension_numbers<[1], [0], [0], [1], [0, 0, 1, 1], [], []>} : vector<2x32xf32>, vector<32x128xf32>, vector<2x128xf32> -> vector<2x128xf32>
    %146 = arith.addf %144, %145 : vector<2x128xf32>
    %147 = vector.extract_strided_slice %146 {offsets = [0, 0], sizes = [2, 32], strides = [1, 1]} : vector<2x128xf32> to vector<2x32xf32>
    %148 = arith.negf %147 : vector<2x32xf32>
    %149 = math.exp %148 : vector<2x32xf32>
    %cst_41 = arith.constant 1.000000e+00 : f32
    %150 = vector.broadcast %cst_41 : f32 to vector<2x32xf32>
    %151 = arith.addf %150, %149 : vector<2x32xf32>
    %152 = arith.divf %150, %151 : vector<2x32xf32>
    %153 = vector.extract_strided_slice %146 {offsets = [0, 32], sizes = [2, 32], strides = [1, 1]} : vector<2x128xf32> to vector<2x32xf32>
    %154 = arith.negf %153 : vector<2x32xf32>
    %155 = math.exp %154 : vector<2x32xf32>
    %cst_42 = arith.constant 1.000000e+00 : f32
    %156 = vector.broadcast %cst_42 : f32 to vector<2x32xf32>
    %157 = arith.addf %156, %155 : vector<2x32xf32>
    %158 = arith.divf %156, %157 : vector<2x32xf32>
    %159 = vector.extract_strided_slice %146 {offsets = [0, 64], sizes = [2, 32], strides = [1, 1]} : vector<2x128xf32> to vector<2x32xf32>
    %160 = math.tanh %159 : vector<2x32xf32>
    %161 = vector.extract_strided_slice %146 {offsets = [0, 96], sizes = [2, 32], strides = [1, 1]} : vector<2x128xf32> to vector<2x32xf32>
    %162 = arith.negf %161 : vector<2x32xf32>
    %163 = math.exp %162 : vector<2x32xf32>
    %cst_43 = arith.constant 1.000000e+00 : f32
    %164 = vector.broadcast %cst_43 : f32 to vector<2x32xf32>
    %165 = arith.addf %164, %163 : vector<2x32xf32>
    %166 = arith.divf %164, %165 : vector<2x32xf32>
    %167 = arith.mulf %158, %136 : vector<2x32xf32>
    %168 = arith.mulf %152, %160 : vector<2x32xf32>
    %169 = arith.addf %167, %168 : vector<2x32xf32>
    %170 = math.tanh %169 : vector<2x32xf32>
    %171 = arith.mulf %166, %170 : vector<2x32xf32>
    %172 = arith.index_cast %142 : i32 to index
    %c0_44 = arith.constant 0 : index
    %173 = vector.load %arg10[%172, %c0_44] : memref<16x32xf32, #tpu.memory_space<vmem>>, vector<2x32xf32>
    tpu.vector_store %arg10[%172, %c0_44], %171 {strides = array<i32>} : memref<16x32xf32, #tpu.memory_space<vmem>>, vector<2x32xf32>,
    %c5_i32 = arith.constant 5 : i32
    %c2_i32_45 = arith.constant 2 : i32
    %174 = arith.muli %c5_i32, %c2_i32_45 : i32
    %175 = tpu.assume_multiple %174, 2 : i32
    %176 = arith.index_cast %175 : i32 to index
    %c0_46 = arith.constant 0 : index
    %177 = vector.load %arg9[%176, %c0_46] : memref<16x128xf32, #tpu.memory_space<vmem>>, vector<2x128xf32>
    %cst_47 = arith.constant dense<0.000000e+00> : vector<2x128xf32>
    %178 = tpu.matmul %171, %7, %cst_47 {dimension_numbers = #tpu.dot_dimension_numbers<[1], [0], [0], [1], [0, 0, 1, 1], [], []>} : vector<2x32xf32>, vector<32x128xf32>, vector<2x128xf32> -> vector<2x128xf32>
    %179 = arith.addf %177, %178 : vector<2x128xf32>
    %180 = vector.extract_strided_slice %179 {offsets = [0, 0], sizes = [2, 32], strides = [1, 1]} : vector<2x128xf32> to vector<2x32xf32>
    %181 = arith.negf %180 : vector<2x32xf32>
    %182 = math.exp %181 : vector<2x32xf32>
    %cst_48 = arith.constant 1.000000e+00 : f32
    %183 = vector.broadcast %cst_48 : f32 to vector<2x32xf32>
    %184 = arith.addf %183, %182 : vector<2x32xf32>
    %185 = arith.divf %183, %184 : vector<2x32xf32>
    %186 = vector.extract_strided_slice %179 {offsets = [0, 32], sizes = [2, 32], strides = [1, 1]} : vector<2x128xf32> to vector<2x32xf32>
    %187 = arith.negf %186 : vector<2x32xf32>
    %188 = math.exp %187 : vector<2x32xf32>
    %cst_49 = arith.constant 1.000000e+00 : f32
    %189 = vector.broadcast %cst_49 : f32 to vector<2x32xf32>
    %190 = arith.addf %189, %188 : vector<2x32xf32>
    %191 = arith.divf %189, %190 : vector<2x32xf32>
    %192 = vector.extract_strided_slice %179 {offsets = [0, 64], sizes = [2, 32], strides = [1, 1]} : vector<2x128xf32> to vector<2x32xf32>
    %193 = math.tanh %192 : vector<2x32xf32>
    %194 = vector.extract_strided_slice %179 {offsets = [0, 96], sizes = [2, 32], strides = [1, 1]} : vector<2x128xf32> to vector<2x32xf32>
    %195 = arith.negf %194 : vector<2x32xf32>
    %196 = math.exp %195 : vector<2x32xf32>
    %cst_50 = arith.constant 1.000000e+00 : f32
    %197 = vector.broadcast %cst_50 : f32 to vector<2x32xf32>
    %198 = arith.addf %197, %196 : vector<2x32xf32>
    %199 = arith.divf %197, %198 : vector<2x32xf32>
    %200 = arith.mulf %191, %169 : vector<2x32xf32>
    %201 = arith.mulf %185, %193 : vector<2x32xf32>
    %202 = arith.addf %200, %201 : vector<2x32xf32>
    %203 = math.tanh %202 : vector<2x32xf32>
    %204 = arith.mulf %199, %203 : vector<2x32xf32>
    %205 = arith.index_cast %175 : i32 to index
    %c0_51 = arith.constant 0 : index
    %206 = vector.load %arg10[%205, %c0_51] : memref<16x32xf32, #tpu.memory_space<vmem>>, vector<2x32xf32>
    tpu.vector_store %arg10[%205, %c0_51], %204 {strides = array<i32>} : memref<16x32xf32, #tpu.memory_space<vmem>>, vector<2x32xf32>,
    %c6_i32 = arith.constant 6 : i32
    %c2_i32_52 = arith.constant 2 : i32
    %207 = arith.muli %c6_i32, %c2_i32_52 : i32
    %208 = tpu.assume_multiple %207, 2 : i32
    %209 = arith.index_cast %208 : i32 to index
    %c0_53 = arith.constant 0 : index
    %210 = vector.load %arg9[%209, %c0_53] : memref<16x128xf32, #tpu.memory_space<vmem>>, vector<2x128xf32>
    %cst_54 = arith.constant dense<0.000000e+00> : vector<2x128xf32>
    %211 = tpu.matmul %204, %7, %cst_54 {dimension_numbers = #tpu.dot_dimension_numbers<[1], [0], [0], [1], [0, 0, 1, 1], [], []>} : vector<2x32xf32>, vector<32x128xf32>, vector<2x128xf32> -> vector<2x128xf32>
    %212 = arith.addf %210, %211 : vector<2x128xf32>
    %213 = vector.extract_strided_slice %212 {offsets = [0, 0], sizes = [2, 32], strides = [1, 1]} : vector<2x128xf32> to vector<2x32xf32>
    %214 = arith.negf %213 : vector<2x32xf32>
    %215 = math.exp %214 : vector<2x32xf32>
    %cst_55 = arith.constant 1.000000e+00 : f32
    %216 = vector.broadcast %cst_55 : f32 to vector<2x32xf32>
    %217 = arith.addf %216, %215 : vector<2x32xf32>
    %218 = arith.divf %216, %217 : vector<2x32xf32>
    %219 = vector.extract_strided_slice %212 {offsets = [0, 32], sizes = [2, 32], strides = [1, 1]} : vector<2x128xf32> to vector<2x32xf32>
    %220 = arith.negf %219 : vector<2x32xf32>
    %221 = math.exp %220 : vector<2x32xf32>
    %cst_56 = arith.constant 1.000000e+00 : f32
    %222 = vector.broadcast %cst_56 : f32 to vector<2x32xf32>
    %223 = arith.addf %222, %221 : vector<2x32xf32>
    %224 = arith.divf %222, %223 : vector<2x32xf32>
    %225 = vector.extract_strided_slice %212 {offsets = [0, 64], sizes = [2, 32], strides = [1, 1]} : vector<2x128xf32> to vector<2x32xf32>
    %226 = math.tanh %225 : vector<2x32xf32>
    %227 = vector.extract_strided_slice %212 {offsets = [0, 96], sizes = [2, 32], strides = [1, 1]} : vector<2x128xf32> to vector<2x32xf32>
    %228 = arith.negf %227 : vector<2x32xf32>
    %229 = math.exp %228 : vector<2x32xf32>
    %cst_57 = arith.constant 1.000000e+00 : f32
    %230 = vector.broadcast %cst_57 : f32 to vector<2x32xf32>
    %231 = arith.addf %230, %229 : vector<2x32xf32>
    %232 = arith.divf %230, %231 : vector<2x32xf32>
    %233 = arith.mulf %224, %202 : vector<2x32xf32>
    %234 = arith.mulf %218, %226 : vector<2x32xf32>
    %235 = arith.addf %233, %234 : vector<2x32xf32>
    %236 = math.tanh %235 : vector<2x32xf32>
    %237 = arith.mulf %232, %236 : vector<2x32xf32>
    %238 = arith.index_cast %208 : i32 to index
    %c0_58 = arith.constant 0 : index
    %239 = vector.load %arg10[%238, %c0_58] : memref<16x32xf32, #tpu.memory_space<vmem>>, vector<2x32xf32>
    tpu.vector_store %arg10[%238, %c0_58], %237 {strides = array<i32>} : memref<16x32xf32, #tpu.memory_space<vmem>>, vector<2x32xf32>,
    %c7_i32 = arith.constant 7 : i32
    %c2_i32_59 = arith.constant 2 : i32
    %240 = arith.muli %c7_i32, %c2_i32_59 : i32
    %241 = tpu.assume_multiple %240, 2 : i32
    %242 = arith.index_cast %241 : i32 to index
    %c0_60 = arith.constant 0 : index
    %243 = vector.load %arg9[%242, %c0_60] : memref<16x128xf32, #tpu.memory_space<vmem>>, vector<2x128xf32>
    %cst_61 = arith.constant dense<0.000000e+00> : vector<2x128xf32>
    %244 = tpu.matmul %237, %7, %cst_61 {dimension_numbers = #tpu.dot_dimension_numbers<[1], [0], [0], [1], [0, 0, 1, 1], [], []>} : vector<2x32xf32>, vector<32x128xf32>, vector<2x128xf32> -> vector<2x128xf32>
    %245 = arith.addf %243, %244 : vector<2x128xf32>
    %246 = vector.extract_strided_slice %245 {offsets = [0, 0], sizes = [2, 32], strides = [1, 1]} : vector<2x128xf32> to vector<2x32xf32>
    %247 = arith.negf %246 : vector<2x32xf32>
    %248 = math.exp %247 : vector<2x32xf32>
    %cst_62 = arith.constant 1.000000e+00 : f32
    %249 = vector.broadcast %cst_62 : f32 to vector<2x32xf32>
    %250 = arith.addf %249, %248 : vector<2x32xf32>
    %251 = arith.divf %249, %250 : vector<2x32xf32>
    %252 = vector.extract_strided_slice %245 {offsets = [0, 32], sizes = [2, 32], strides = [1, 1]} : vector<2x128xf32> to vector<2x32xf32>
    %253 = arith.negf %252 : vector<2x32xf32>
    %254 = math.exp %253 : vector<2x32xf32>
    %cst_63 = arith.constant 1.000000e+00 : f32
    %255 = vector.broadcast %cst_63 : f32 to vector<2x32xf32>
    %256 = arith.addf %255, %254 : vector<2x32xf32>
    %257 = arith.divf %255, %256 : vector<2x32xf32>
    %258 = vector.extract_strided_slice %245 {offsets = [0, 64], sizes = [2, 32], strides = [1, 1]} : vector<2x128xf32> to vector<2x32xf32>
    %259 = math.tanh %258 : vector<2x32xf32>
    %260 = vector.extract_strided_slice %245 {offsets = [0, 96], sizes = [2, 32], strides = [1, 1]} : vector<2x128xf32> to vector<2x32xf32>
    %261 = arith.negf %260 : vector<2x32xf32>
    %262 = math.exp %261 : vector<2x32xf32>
    %cst_64 = arith.constant 1.000000e+00 : f32
    %263 = vector.broadcast %cst_64 : f32 to vector<2x32xf32>
    %264 = arith.addf %263, %262 : vector<2x32xf32>
    %265 = arith.divf %263, %264 : vector<2x32xf32>
    %266 = arith.mulf %257, %235 : vector<2x32xf32>
    %267 = arith.mulf %251, %259 : vector<2x32xf32>
    %268 = arith.addf %266, %267 : vector<2x32xf32>
    %269 = math.tanh %268 : vector<2x32xf32>
    %270 = arith.mulf %265, %269 : vector<2x32xf32>
    %271 = arith.index_cast %241 : i32 to index
    %c0_65 = arith.constant 0 : index
    %272 = vector.load %arg10[%271, %c0_65] : memref<16x32xf32, #tpu.memory_space<vmem>>, vector<2x32xf32>
    tpu.vector_store %arg10[%271, %c0_65], %270 {strides = array<i32>} : memref<16x32xf32, #tpu.memory_space<vmem>>, vector<2x32xf32>,
    %c8_i32 = arith.constant 8 : i32
    %c0_66 = arith.constant 0 : index
    %c0_67 = arith.constant 0 : index
    %273 = vector.load %arg10[%c0_66, %c0_67] : memref<16x32xf32, #tpu.memory_space<vmem>>, vector<16x32xf32>
    %274 = math.tanh %273 : vector<16x32xf32>
    %cst_68 = arith.constant dense<0.000000e+00> : vector<16xf32>
    %275 = vector.multi_reduction <add>, %274, %cst_68 [1] : vector<16x32xf32> to vector<16xf32>
    %276 = vector.shape_cast %275 : vector<16xf32> to vector<16x1xf32>
    %cst_69 = arith.constant 3.200000e+01 : f32
    %277 = vector.broadcast %cst_69 : f32 to vector<16x1xf32>
    %278 = arith.divf %276, %277 : vector<16x1xf32>
    %279 = vector.broadcast %278 : vector<16x1xf32> to vector<16x32xf32>
    %280 = arith.subf %274, %279 : vector<16x32xf32>
    %281 = arith.mulf %280, %280 : vector<16x32xf32>
    %cst_70 = arith.constant dense<0.000000e+00> : vector<16xf32>
    %282 = vector.multi_reduction <add>, %281, %cst_70 [1] : vector<16x32xf32> to vector<16xf32>
    %283 = vector.shape_cast %282 : vector<16xf32> to vector<16x1xf32>
    %cst_71 = arith.constant 3.200000e+01 : f32
    %284 = vector.broadcast %cst_71 : f32 to vector<16x1xf32>
    %285 = arith.divf %283, %284 : vector<16x1xf32>
    %286 = vector.broadcast %278 : vector<16x1xf32> to vector<16x32xf32>
    %287 = arith.subf %274, %286 : vector<16x32xf32>
    %cst_72 = arith.constant 9.99999974E-6 : f32
    %288 = vector.broadcast %cst_72 : f32 to vector<16x1xf32>
    %289 = arith.addf %285, %288 : vector<16x1xf32>
    %290 = math.rsqrt %289 : vector<16x1xf32>
    %291 = vector.broadcast %290 : vector<16x1xf32> to vector<16x32xf32>
    %292 = arith.mulf %287, %291 : vector<16x32xf32>
    %c0_73 = arith.constant 0 : index
    %c0_74 = arith.constant 0 : index
    %293 = vector.load %arg4[%c0_73, %c0_74] : memref<1x32xf32, #tpu.memory_space<vmem>>, vector<1x32xf32>
    %294 = vector.broadcast %293 : vector<1x32xf32> to vector<16x32xf32>
    %295 = arith.mulf %292, %294 : vector<16x32xf32>
    %c0_75 = arith.constant 0 : index
    %c0_76 = arith.constant 0 : index
    %296 = vector.load %arg5[%c0_75, %c0_76] : memref<1x32xf32, #tpu.memory_space<vmem>>, vector<1x32xf32>
    %297 = vector.broadcast %296 : vector<1x32xf32> to vector<16x32xf32>
    %298 = arith.addf %295, %297 : vector<16x32xf32>
    %c0_77 = arith.constant 0 : index
    %c0_78 = arith.constant 0 : index
    %299 = vector.load %arg6[%c0_77, %c0_78] : memref<32x29xf32, #tpu.memory_space<vmem>>, vector<32x29xf32>
    %cst_79 = arith.constant dense<0.000000e+00> : vector<16x29xf32>
    %300 = tpu.matmul %298, %299, %cst_79 {dimension_numbers = #tpu.dot_dimension_numbers<[1], [0], [0], [1], [0, 0, 1, 1], [], []>} : vector<16x32xf32>, vector<32x29xf32>, vector<16x29xf32> -> vector<16x29xf32>
    %c0_80 = arith.constant 0 : index
    %c0_81 = arith.constant 0 : index
    %301 = vector.load %arg7[%c0_80, %c0_81] : memref<1x29xf32, #tpu.memory_space<vmem>>, vector<1x29xf32>
    %302 = vector.broadcast %301 : vector<1x29xf32> to vector<16x29xf32>
    %303 = arith.addf %300, %302 : vector<16x29xf32>
    %cst_82 = arith.constant dense<0xFF800000> : vector<16xf32>
    %304 = vector.multi_reduction <maximumf>, %303, %cst_82 [1] : vector<16x29xf32> to vector<16xf32>
    %305 = vector.shape_cast %304 : vector<16xf32> to vector<16x1xf32>
    %306 = vector.broadcast %305 : vector<16x1xf32> to vector<16x29xf32>
    %307 = arith.subf %303, %306 : vector<16x29xf32>
    %308 = math.exp %307 : vector<16x29xf32>
    %cst_83 = arith.constant dense<0.000000e+00> : vector<16xf32>
    %309 = vector.multi_reduction <add>, %308, %cst_83 [1] : vector<16x29xf32> to vector<16xf32>
    %310 = vector.shape_cast %309 : vector<16xf32> to vector<16x1xf32>
    %311 = vector.broadcast %310 : vector<16x1xf32> to vector<16x29xf32>
    %312 = arith.divf %308, %311 : vector<16x29xf32>
    %c0_84 = arith.constant 0 : index
    %c0_85 = arith.constant 0 : index
    %313 = vector.load %arg8[%c0_84, %c0_85] : memref<16x29xf32, #tpu.memory_space<vmem>>, vector<16x29xf32>
    tpu.vector_store %arg8[%c0_84, %c0_85], %312 {strides = array<i32>} : memref<16x29xf32, #tpu.memory_space<vmem>>, vector<16x29xf32>,
    return
  }
}

</mosaic_0001>

<bundles_post_ra>
// kernel: tpu_custom_call.1
= control target key start
LH: loop header
LB: loop body
LE: loop exit
PB: predicated region body
PF: predicated region fallthrough
CT: control target
= control target key end

     0   :  { %13 = vsyncpa [#allocation5], 0  ;;  %s1931_s0 = inlined_call_operand.hbm [shape: f32[16,16], index: 0, kind: input, shape index: {}]   ;;  %s1932_s1 = inlined_call_operand.hbm [shape: f32[16,128], index: 1, kind: input, shape index: {}]   ;;  %s1933_s2 = inlined_call_operand.hbm [shape: f32[32,128], index: 2, kind: input, shape index: {}]   ;;  %s1934_s3 = inlined_call_operand.vmem [shape: f32[1,128], index: 3, kind: input, shape index: {}]   ;;  %s1935_s4 = inlined_call_operand.vmem [shape: f32[1,32], index: 4, kind: input, shape index: {}]   ;;  %s1936_s5 = inlined_call_operand.vmem [shape: f32[1,32], index: 5, kind: input, shape index: {}]   ;;  %s1937_s6 = inlined_call_operand.hbm [shape: f32[32,29], index: 6, kind: input, shape index: {}]   ;;  %s1938_s7 = inlined_call_operand.vmem [shape: f32[1,29], index: 7, kind: input, shape index: {}]   ;;  %s1939_s8 = inlined_call_operand.hbm [shape: f32[16,29], index: 8, kind: output, shape index: {}]  }
   0x1   :  { %14 = vsyncpa [#allocation8], 0 }
   0x2   :  { %15 = vsyncpa [#allocation11], 0 }
   0x3   :  { %16 = vsyncpa [#allocation6], 0  ;;  %s1659_s27 = smov [#allocation7]   ;;  %s1660_s29 = smov [#allocation4]  }
   0x4   :  { %s34_s28 = sshll.u32 %s1659_s27, 4  ;;  %s22_s30 = sshll.u32 %s1660_s29, 4  ;;  %s35_s28 = int_to_ptr.vmem [resolvable:$true] %s34_s28  ;;  %s1716_s30 = int_to_ptr.vmem [resolvable:$true] %s22_s30 }
   0x5   :  { %s1541_s11 = scalar_lea.hbm %s1932_s1, 256 }
   0x6   :  { %p1542_p0 = scmp.ne.s32.totalorder %s1932_s1, %s1541_s11  ;;  %p1545_p1 = scmp.lt.u32.totalorder %s1541_s11, %s1932_s1 }
   0x8   :  { %p1547_p2 = pnand %p1545_p1, %p1542_p0 }
   0xa   :  { %1550 = shalt.err (!%p1547_p2)
}
   0xb   :  { %s1551_s16 = scalar_lea.vmem %s35_s28, 256  ;;  %p1556_p4 = scmp.lt.s32.totalorder %s35_s28, %s35_s28 }
   0xc   :  { %p1552_p3 = scmp.ne.s32.totalorder %s35_s28, %s1551_s16  ;;  %p1557_p5 = scmp.lt.s32.totalorder %s1551_s16, %s1551_s16 }
   0xe   :  { %p1558_p6 = por %p1557_p5, %p1556_p4 }
  0x10   :  { %p1559_p7 = pnand %p1558_p6, %p1552_p3 }
  0x12   :  { %1562 = shalt.err (!%p1559_p7)
}
  0x13   :  { %s1661_s17 = smov 128   ;;  %s1662_s18 = smov 8  }
  0x14   :  { %40 = dma.hbm_to_vmem [thread:$0]  %s1932_s1, 256, %s35_s28, [#allocation8], %s1661_s17, %s1661_s17, %s1662_s18  }
  0x15   :  { %s1563_s23 = scalar_lea.hbm %s1931_s0, 256 }
  0x16   :  { %p1564_p8 = scmp.ne.s32.totalorder %s1931_s0, %s1563_s23  ;;  %p1567_p9 = scmp.lt.u32.totalorder %s1563_s23, %s1931_s0 }
  0x18   :  { %p1569_p10 = pnand %p1567_p9, %p1564_p8 }
  0x1a   :  { %1572 = shalt.err (!%p1569_p10)
}
  0x1b   :  { %s1573_s29 = scalar_lea.vmem %s1716_s30, 256  ;;  %p1578_p12 = scmp.lt.s32.totalorder %s1716_s30, %s1716_s30 }
  0x1c   :  { %p1574_p11 = scmp.ne.s32.totalorder %s1716_s30, %s1573_s29  ;;  %p1579_p13 = scmp.lt.s32.totalorder %s1573_s29, %s1573_s29 }
  0x1e   :  { %p1580_p0 = por %p1579_p13, %p1578_p12 }
  0x20   :  { %p1581_p1 = pnand %p1580_p0, %p1574_p11 }
  0x22   :  { %1584 = shalt.err (!%p1581_p1)
}
  0x23   :  { %28 = dma.hbm_to_vmem [thread:$0]  %s1931_s0, 256, %s1716_s30, [#allocation5], %s1661_s17, %s1661_s17, %s1662_s18  }
  0x24   :  { %s1663_s9 = smov [#allocation9]   ;;  %s1664_s11 = smov [#allocation10]  }
  0x25   :  { %s46_s10 = sshll.u32 %s1663_s9, 4  ;;  %s64_s12 = sshll.u32 %s1664_s11, 4  ;;  %s47_s10 = int_to_ptr.vmem [resolvable:$true] %s46_s10  ;;  %s1753_s12 = int_to_ptr.vmem [resolvable:$true] %s64_s12 }
  0x26   :  { %s1585_s15 = scalar_lea.hbm %s1933_s2, 512 }
  0x27   :  { %p1586_p2 = scmp.ne.s32.totalorder %s1933_s2, %s1585_s15  ;;  %p1589_p3 = scmp.lt.u32.totalorder %s1585_s15, %s1933_s2 }
  0x29   :  { %p1591_p4 = pnand %p1589_p3, %p1586_p2 }
  0x2b   :  { %1594 = shalt.err (!%p1591_p4)
}
  0x2c   :  { %s1595_s0 = scalar_lea.vmem %s47_s10, 512  ;;  %p1600_p6 = scmp.lt.s32.totalorder %s47_s10, %s47_s10 }
  0x2d   :  { %p1596_p5 = scmp.ne.s32.totalorder %s47_s10, %s1595_s0  ;;  %p1601_p7 = scmp.lt.s32.totalorder %s1595_s0, %s1595_s0 }
  0x2f   :  { %p1602_p8 = por %p1601_p7, %p1600_p6 }
  0x31   :  { %p1603_p9 = pnand %p1602_p8, %p1596_p5 }
  0x33   :  { %1606 = shalt.err (!%p1603_p9)
}
  0x34   :  { %52 = dma.hbm_to_vmem [thread:$0]  %s1933_s2, 512, %s47_s10, [#allocation8], %s1661_s17, %s1661_s17, %s1662_s18  }
  0x35   :  { %s1607_s25 = scalar_lea.hbm %s1937_s6, 512 }
  0x36   :  { %p1608_p10 = scmp.ne.s32.totalorder %s1937_s6, %s1607_s25  ;;  %p1611_p11 = scmp.lt.u32.totalorder %s1607_s25, %s1937_s6 }
  0x38   :  { %p1613_p12 = pnand %p1611_p11, %p1608_p10 }
  0x3a   :  { %1616 = shalt.err (!%p1613_p12)
}
  0x3b   :  { %s1617_s28 = scalar_lea.vmem %s1753_s12, 512  ;;  %p1622_p0 = scmp.lt.s32.totalorder %s1753_s12, %s1753_s12 }
  0x3c   :  { %p1618_p13 = scmp.ne.s32.totalorder %s1753_s12, %s1617_s28  ;;  %p1623_p1 = scmp.lt.s32.totalorder %s1617_s28, %s1617_s28 }
  0x3e   :  { %p1624_p2 = por %p1623_p1, %p1622_p0 }
  0x40   :  { %p1625_p3 = pnand %p1624_p2, %p1618_p13 }
  0x42   :  { %1628 = shalt.err (!%p1625_p3)
}
  0x43   :  { %70 = dma.hbm_to_vmem [thread:$0]  %s1937_s6, 512, %s1753_s12, [#allocation11], %s1661_s17, %s1661_s17, %s1662_s18  }
  0x44   :  { %1651 = dma.done.wait [#allocation5], 256  }
  0x45   :  { %1652 = vsyncadd [#allocation5], 4294967040 }
  0x46   :  { %1653 = dma.done.wait [#allocation8], 768  }
  0x47   :  { %1654 = vsyncadd [#allocation8], 4294966528 }
  0x48   :  { %1655 = dma.done.wait [#allocation11], 512  }
  0x49   :  { %1656 = vsyncadd [#allocation11], 4294966784  ;;  %v1665_v0 = vmov 0.0|0.0   ;;  %vm1666_vm0 = vmmov 0   ;;  %v1667_v1 = vmov 0.0   ;;  %vm96_vm1 = vcmask 130048  }
  0x4a   :  { %1393 = vmatprep.subr.bf16.mxu1 %v1665_v0  ;;  %1298 = vmatprep.mubr.msk.f32.mxu1 %vm1666_vm0, %v1667_v1  ;;  %v87_v2 = vld [vmem:[#allocation7] sm:$0xff]  ;;  %v88_v3 = vld [vmem:[#allocation7 + $0x8] sm:$0xff]  ;;  %v85_v4 = vld [vmem:[#allocation4] sm:$0xff]  ;;  %s1668_s11 = smov 64   ;;  %vm288_vm2 = vcmask 254976   ;;  %vm185_vm3 = vcmask 261120  }
  0x4b   :  { %v1389_v5 = vpack.c.bf16 %v88_v3, %v87_v2  ;;  %1287 = vmatprep.mubr.msk.f32.mxu0 %vm96_vm1, %v85_v4  ;;  %v180_v6 = vld [vmem:[#allocation9] sm:$0xff]  ;;  %v181_v7 = vld [vmem:[#allocation9 + $0x8] sm:$0xff]  ;;  %v182_v9 = vld [vmem:[#allocation9 + $0x10] sm:$0xff]  ;;  %vm1166_vm4 = vcmask 236544  }
  0x4c   :  { %v1794_v8 = vpack.c.bf16 %v181_v7, %v180_v6  ;;  %v183_v10 = vld [vmem:[#allocation9 + $0x18] sm:$0xff]  ;;  %v86_v11 = vld [vmem:[#allocation4 + $0x8] sm:$0xff]  ;;  %v1210_v13 = vld [vmem:[%s1934_s3] ss:$0 sm:$0xff]  ;;  %s1669_s3 = smov 32  }
  0x4d   :  { %1390 = vmatprep.subr.bf16.mxu0 %v1389_v5  ;;  %v1797_v12 = vpack.c.bf16 %v183_v10, %v182_v9 }
  0x4e   :  { %1392 = vmatpush3.bf16.msra.mxu0 %v1389_v5  ;;  %1395 = vmatpush3.bf16.msra.mxu1 %v1794_v8 }
  0x4f   :  { %1396 = vmatprep.subr.bf16.mxu1 %v1665_v0  ;;  %1399 = vmatprep.subr.bf16.mxu0 %v1665_v0 }
  0x51   :  { %1288 = vmatmul.mubr.msk.f32.vlgmr.msra.gmra.mrb[0].mxu0 %vm96_vm1, %v86_v11 }
  0x52   :  { %1398 = vmatpush3.bf16.msra.mxu1 %v1797_v12  ;;  %1401 = vmatpush3.bf16.msra.mxu0 %v1794_v8 }
  0x53   :  { %1402 = vmatprep.subr.bf16.mxu0 %v1665_v0  ;;  %1309 = vmatprep.mubr.msk.f32.mxu0 %vm1666_vm0, %v1667_v1 }
  0x54   :  { %1405 = vmatprep.subr.bf16.mxu1 %v1665_v0 }
  0x55   :  { %1299 = vmatmul.mubr.f32.vlgmr.msra.gmra.mrb[0].mxu1 %v1667_v1 }
  0x56   :  { %1404 = vmatpush3.bf16.msra.mxu0 %v1797_v12  ;;  %1407 = vmatpush3.bf16.msra.mxu1 %v1794_v8 }
  0x57   :  { %1408 = vmatprep.subr.bf16.mxu1 %v1665_v0  ;;  %1320 = vmatprep.mubr.msk.f32.mxu1 %vm1666_vm0, %v1667_v1 }
  0x58   :  { %1411 = vmatprep.subr.bf16.mxu0 %v1665_v0 }
  0x5a   :  { %1410 = vmatpush3.bf16.msra.mxu1 %v1797_v12 }
  0x5b   :  { %1417 = vmatprep.subr.bf16.mxu1 %v1665_v0 }
 0x124   :  { %v1289_v14 = vpop.f32.mrb[0].mxu0 }
 0x125   :  { %v175_v15 = vadd.f32 %v1289_v14, %v1210_v13  ;;  %v169_v16 = vpop.f32.mrb[1].mxu0 }
 0x126   :  { %v170_v17 = vadd.f32 %v1210_v13, %v169_v16 }
 0x127   :  { %179 = vst [vmem:[#allocation2 + $0x8] sm:$0xff] %v175_v15 }
 0x128   :  { %178 = vst [vmem:[#allocation2] sm:$0xff] %v170_v17  ;;  %v255_v18 = vpop.f32.mrb[0].mxu1 }
 0x129   :  { %v1300_v19 = vpop.f32.mrb[1].mxu1 }
 0x12f   :  { %v184_v20 = vld [vmem:[#allocation2] sm:$0x3]  ;;  %v291_v36 = vld [vmem:[#allocation2 + $0x2] sm:$0x3]  ;;  %v396_v54 = vld [vmem:[#allocation2 + $0x4] sm:$0x3] }
 0x130   :  { %v259_v21 = vadd.f32 %v255_v18, %v184_v20  ;;  %v501_v11 = vld [vmem:[#allocation2 + $0x6] sm:$0x3] }
 0x132   :  { %1461 = vtanh.f32 %v259_v21  ;;  %v1213_v23 = vmul.f32 -1.442695, %v259_v21 }
 0x134   :  { %1463 = vpow2.f32 %v1213_v23 }
 0x13c   :  { %v1462_v22 = vpop.eup %1461 }
 0x13d   :  { %269 = vrot.lane.b32.xlu0 %v1462_v22, %s1668_s11 }
 0x13e   :  { %v1464_v24 = vpop.eup %1463 }
 0x13f   :  { %v263_v25 = vadd.f32 1.0, %v1464_v24 }
 0x141   :  { %1465 = vrcp.f32 %v263_v25 }
 0x14b   :  { %v1466_v26 = vpop.eup %1465 }
 0x14c   :  { %v267_v29 = vmul.f32 0.0, %v1466_v26 }
 0x1af   :  { %v270_v27 = vpop.permute.xlu0 %269 }
 0x1b0   :  { %v272_v28 = vmul.f32 %v1466_v26, %v270_v27 }
 0x1b2   :  { %274 = vrot.lane.b32.xlu0 %v272_v28, %s1669_s3 }
 0x224   :  { %v275_v30 = vpop.permute.xlu0 %274 }
 0x225   :  { %v277_v31 = vadd.f32 %v275_v30, %v267_v29  ;;  %v606_v30 = vld [vmem:[#allocation2 + $0x8] sm:$0x3] }
 0x227   :  { %1467 = vtanh.f32 %v277_v31 }
 0x231   :  { %v1468_v32 = vpop.eup %1467 }
 0x232   :  { %280 = vrot.lane.b32.xlu1 %v1468_v32, %s1668_s11 }
 0x2a4   :  { %v281_v33 = vpop.permute.xlu1 %280 }
 0x2a5   :  { %v283_v34 = vmul.f32 %v1466_v26, %v281_v33 }
 0x2a7   :  { %285 = vrot.lane.b32.xlu1 %v283_v34, %s1669_s3 }
 0x319   :  { %v286_v35 = vpop.permute.xlu1 %285 }
 0x31a   :  { %289 = vst.msk [vmem:[#allocation3] sm:$0x3] %vm288_vm2, %v286_v35  ;;  %1310 = vmatmul.mubr.msk.f32.vlgmr.msra.gmra.mrb[2].mxu0 %vm185_vm3, %v286_v35 }
 0x31b   :  { %1413 = vmatpush3.bf16.msra.mxu0 %v1794_v8  ;;  %1331 = vmatprep.mubr.msk.f32.mxu0 %vm1666_vm0, %v1667_v1 }
 0x31c   :  { %1414 = vmatprep.subr.bf16.mxu0 %v1665_v0 }
 0x31f   :  { %1416 = vmatpush3.bf16.msra.mxu0 %v1797_v12 }
 0x320   :  { %1423 = vmatprep.subr.bf16.mxu0 %v1665_v0 }
 0x3ed   :  { %v360_v37 = vpop.f32.mrb[2].mxu0 }
 0x3ee   :  { %v364_v38 = vadd.f32 %v360_v37, %v291_v36  ;;  %v1311_v39 = vpop.f32.mrb[3].mxu0 }
 0x3f0   :  { %1469 = vtanh.f32 %v364_v38  ;;  %v1215_v41 = vmul.f32 -1.442695, %v364_v38 }
 0x3f2   :  { %1471 = vpow2.f32 %v1215_v41 }
 0x3fa   :  { %v1470_v40 = vpop.eup %1469 }
 0x3fb   :  { %374 = vrot.lane.b32.xlu0 %v1470_v40, %s1668_s11 }
 0x3fc   :  { %v1472_v42 = vpop.eup %1471 }
 0x3fd   :  { %v368_v43 = vadd.f32 1.0, %v1472_v42 }
 0x3ff   :  { %1473 = vrcp.f32 %v368_v43 }
 0x409   :  { %v1474_v44 = vpop.eup %1473 }
 0x40a   :  { %v372_v47 = vmul.f32 %v1474_v44, %v277_v31 }
 0x46d   :  { %v375_v45 = vpop.permute.xlu0 %374 }
 0x46e   :  { %v377_v46 = vmul.f32 %v1474_v44, %v375_v45 }
 0x470   :  { %379 = vrot.lane.b32.xlu1 %v377_v46, %s1669_s3 }
 0x4e2   :  { %v380_v48 = vpop.permute.xlu1 %379 }
 0x4e3   :  { %v382_v49 = vadd.f32 %v380_v48, %v372_v47  ;;  %v711_v48 = vld [vmem:[#allocation2 + $0xa] sm:$0x3] }
 0x4e5   :  { %1475 = vtanh.f32 %v382_v49 }
 0x4ef   :  { %v1476_v50 = vpop.eup %1475 }
 0x4f0   :  { %385 = vrot.lane.b32.xlu0 %v1476_v50, %s1668_s11 }
 0x562   :  { %v386_v51 = vpop.permute.xlu0 %385 }
 0x563   :  { %v388_v52 = vmul.f32 %v1474_v44, %v386_v51 }
 0x565   :  { %390 = vrot.lane.b32.xlu1 %v388_v52, %s1669_s3 }
 0x5d7   :  { %v391_v53 = vpop.permute.xlu1 %390 }
 0x5d8   :  { %394 = vst.msk [vmem:[#allocation3 + $0x2] sm:$0x3] %vm288_vm2, %v391_v53  ;;  %1321 = vmatmul.mubr.msk.f32.vlgmr.msra.gmra.mrb[2].mxu1 %vm185_vm3, %v391_v53 }
 0x5d9   :  { %1419 = vmatpush3.bf16.msra.mxu1 %v1794_v8  ;;  %1342 = vmatprep.mubr.msk.f32.mxu1 %vm1666_vm0, %v1667_v1 }
 0x5da   :  { %1420 = vmatprep.subr.bf16.mxu1 %v1665_v0 }
 0x5dd   :  { %1422 = vmatpush3.bf16.msra.mxu1 %v1797_v12 }
 0x5de   :  { %1429 = vmatprep.subr.bf16.mxu1 %v1665_v0 }
 0x6ab   :  { %v465_v55 = vpop.f32.mrb[2].mxu1 }
 0x6ac   :  { %v469_v56 = vadd.f32 %v465_v55, %v396_v54  ;;  %v1322_v57 = vpop.f32.mrb[3].mxu1 }
 0x6ae   :  { %1477 = vtanh.f32 %v469_v56  ;;  %v1217_v59 = vmul.f32 -1.442695, %v469_v56 }
 0x6b0   :  { %1479 = vpow2.f32 %v1217_v59 }
 0x6b8   :  { %v1478_v58 = vpop.eup %1477 }
 0x6b9   :  { %479 = vrot.lane.b32.xlu0 %v1478_v58, %s1668_s11 }
 0x6ba   :  { %v1480_v60 = vpop.eup %1479 }
 0x6bb   :  { %v473_v61 = vadd.f32 1.0, %v1480_v60 }
 0x6bd   :  { %1481 = vrcp.f32 %v473_v61 }
 0x6c7   :  { %v1482_v62 = vpop.eup %1481 }
 0x6c8   :  { %v477_v3 = vmul.f32 %v1482_v62, %v382_v49 }
 0x72b   :  { %v480_v63 = vpop.permute.xlu0 %479 }
 0x72c   :  { %v482_v2 = vmul.f32 %v1482_v62, %v480_v63 }
 0x72e   :  { %484 = vrot.lane.b32.xlu1 %v482_v2, %s1669_s3 }
 0x7a0   :  { %v485_v4 = vpop.permute.xlu1 %484 }
 0x7a1   :  { %v487_v5 = vadd.f32 %v485_v4, %v477_v3 }
 0x7a3   :  { %1483 = vtanh.f32 %v487_v5 }
 0x7ad   :  { %v1484_v6 = vpop.eup %1483 }
 0x7ae   :  { %490 = vrot.lane.b32.xlu0 %v1484_v6, %s1668_s11 }
 0x820   :  { %v491_v7 = vpop.permute.xlu0 %490 }
 0x821   :  { %v493_v9 = vmul.f32 %v1482_v62, %v491_v7  ;;  %v816_v62 = vld [vmem:[#allocation2 + $0xc] sm:$0x3] }
 0x823   :  { %495 = vrot.lane.b32.xlu1 %v493_v9, %s1669_s3 }
 0x895   :  { %v496_v10 = vpop.permute.xlu1 %495 }
 0x896   :  { %499 = vst.msk [vmem:[#allocation3 + $0x4] sm:$0x3] %vm288_vm2, %v496_v10  ;;  %1332 = vmatmul.mubr.msk.f32.vlgmr.msra.gmra.mrb[4].mxu0 %vm185_vm3, %v496_v10 }
 0x897   :  { %1425 = vmatpush3.bf16.msra.mxu0 %v1794_v8  ;;  %1353 = vmatprep.mubr.msk.f32.mxu0 %vm1666_vm0, %v1667_v1 }
 0x898   :  { %1426 = vmatprep.subr.bf16.mxu0 %v1665_v0 }
 0x89b   :  { %1428 = vmatpush3.bf16.msra.mxu0 %v1797_v12 }
 0x89c   :  { %1435 = vmatprep.subr.bf16.mxu0 %v1665_v0 }
 0x969   :  { %v570_v13 = vpop.f32.mrb[4].mxu0 }
 0x96a   :  { %v574_v14 = vadd.f32 %v570_v13, %v501_v11  ;;  %v1333_v15 = vpop.f32.mrb[5].mxu0 }
 0x96c   :  { %1485 = vtanh.f32 %v574_v14  ;;  %v1219_v17 = vmul.f32 -1.442695, %v574_v14 }
 0x96e   :  { %1487 = vpow2.f32 %v1219_v17 }
 0x976   :  { %v1486_v16 = vpop.eup %1485 }
 0x977   :  { %584 = vrot.lane.b32.xlu0 %v1486_v16, %s1668_s11 }
 0x978   :  { %v1488_v18 = vpop.eup %1487 }
 0x979   :  { %v578_v19 = vadd.f32 1.0, %v1488_v18 }
 0x97b   :  { %1489 = vrcp.f32 %v578_v19 }
 0x985   :  { %v1490_v20 = vpop.eup %1489 }
 0x986   :  { %v582_v23 = vmul.f32 %v1490_v20, %v487_v5 }
 0x9e9   :  { %v585_v21 = vpop.permute.xlu0 %584 }
 0x9ea   :  { %v587_v22 = vmul.f32 %v1490_v20, %v585_v21 }
 0x9ec   :  { %589 = vrot.lane.b32.xlu1 %v587_v22, %s1669_s3 }
 0xa5e   :  { %v590_v24 = vpop.permute.xlu1 %589 }
 0xa5f   :  { %v592_v25 = vadd.f32 %v590_v24, %v582_v23 }
 0xa61   :  { %1491 = vtanh.f32 %v592_v25 }
 0xa6b   :  { %v1492_v26 = vpop.eup %1491 }
 0xa6c   :  { %595 = vrot.lane.b32.xlu0 %v1492_v26, %s1668_s11 }
 0xade   :  { %v596_v27 = vpop.permute.xlu0 %595 }
 0xadf   :  { %v598_v28 = vmul.f32 %v1490_v20, %v596_v27  ;;  %v921_v20 = vld [vmem:[#allocation2 + $0xe] sm:$0x3] }
 0xae1   :  { %600 = vrot.lane.b32.xlu1 %v598_v28, %s1669_s3 }
 0xb53   :  { %v601_v29 = vpop.permute.xlu1 %600 }
 0xb54   :  { %604 = vst.msk [vmem:[#allocation3 + $0x6] sm:$0x3] %vm288_vm2, %v601_v29  ;;  %1343 = vmatmul.mubr.msk.f32.vlgmr.msra.gmra.mrb[4].mxu1 %vm185_vm3, %v601_v29 }
 0xb55   :  { %1431 = vmatpush3.bf16.msra.mxu1 %v1794_v8  ;;  %1364 = vmatprep.mubr.msk.f32.mxu1 %vm1666_vm0, %v1667_v1 }
 0xb56   :  { %1432 = vmatprep.subr.bf16.mxu1 %v1665_v0 }
 0xb59   :  { %1434 = vmatpush3.bf16.msra.mxu1 %v1797_v12 }
 0xc27   :  { %v675_v31 = vpop.f32.mrb[4].mxu1 }
 0xc28   :  { %v679_v32 = vadd.f32 %v675_v31, %v606_v30  ;;  %v1344_v33 = vpop.f32.mrb[5].mxu1 }
 0xc2a   :  { %1493 = vtanh.f32 %v679_v32  ;;  %v1221_v35 = vmul.f32 -1.442695, %v679_v32 }
 0xc2c   :  { %1495 = vpow2.f32 %v1221_v35  ;;  %v1025_v35 = vld [vmem:[#allocation3] sm:$0xff] }
 0xc34   :  { %v1494_v34 = vpop.eup %1493 }
 0xc35   :  { %689 = vrot.lane.b32.xlu0 %v1494_v34, %s1668_s11 }
 0xc36   :  { %v1496_v36 = vpop.eup %1495 }
 0xc37   :  { %v683_v37 = vadd.f32 1.0, %v1496_v36 }
 0xc39   :  { %1497 = vrcp.f32 %v683_v37 }
 0xc43   :  { %v1498_v38 = vpop.eup %1497 }
 0xc44   :  { %v687_v41 = vmul.f32 %v1498_v38, %v592_v25 }
 0xca7   :  { %v690_v39 = vpop.permute.xlu0 %689 }
 0xca8   :  { %v692_v40 = vmul.f32 %v1498_v38, %v690_v39 }
 0xcaa   :  { %694 = vrot.lane.b32.xlu1 %v692_v40, %s1669_s3 }
 0xd1c   :  { %v695_v42 = vpop.permute.xlu1 %694 }
 0xd1d   :  { %v697_v43 = vadd.f32 %v695_v42, %v687_v41 }
 0xd1f   :  { %1499 = vtanh.f32 %v697_v43 }
 0xd29   :  { %v1500_v44 = vpop.eup %1499 }
 0xd2a   :  { %700 = vrot.lane.b32.xlu0 %v1500_v44, %s1668_s11 }
 0xd9c   :  { %v701_v45 = vpop.permute.xlu0 %700 }
 0xd9d   :  { %v703_v46 = vmul.f32 %v1498_v38, %v701_v45 }
 0xd9f   :  { %705 = vrot.lane.b32.xlu1 %v703_v46, %s1669_s3 }
 0xe11   :  { %v706_v47 = vpop.permute.xlu1 %705 }
 0xe12   :  { %709 = vst.msk [vmem:[#allocation3 + $0x8] sm:$0x3] %vm288_vm2, %v706_v47  ;;  %1354 = vmatmul.mubr.msk.f32.vlgmr.msra.gmra.mrb[6].mxu0 %vm185_vm3, %v706_v47 }
 0xe13   :  { %1437 = vmatpush3.bf16.msra.mxu0 %v1794_v8  ;;  %1375 = vmatprep.mubr.msk.f32.mxu0 %vm1666_vm0, %v1667_v1 }
 0xe14   :  { %1438 = vmatprep.subr.bf16.mxu0 %v1665_v0 }
 0xe17   :  { %1440 = vmatpush3.bf16.msra.mxu0 %v1797_v12 }
 0xee5   :  { %v780_v49 = vpop.f32.mrb[6].mxu0 }
 0xee6   :  { %v784_v50 = vadd.f32 %v780_v49, %v711_v48  ;;  %v1355_v51 = vpop.f32.mrb[7].mxu0 }
 0xee8   :  { %1501 = vtanh.f32 %v784_v50  ;;  %v1223_v53 = vmul.f32 -1.442695, %v784_v50 }
 0xeea   :  { %1503 = vpow2.f32 %v1223_v53  ;;  %v1228_v53 = vld [vmem:[%s1935_s4] ss:$0 sm:$0xff] }
 0xef2   :  { %v1502_v52 = vpop.eup %1501 }
 0xef3   :  { %794 = vrot.lane.b32.xlu0 %v1502_v52, %s1668_s11 }
 0xef4   :  { %v1504_v54 = vpop.eup %1503 }
 0xef5   :  { %v788_v55 = vadd.f32 1.0, %v1504_v54 }
 0xef7   :  { %1505 = vrcp.f32 %v788_v55  ;;  %v1229_v55 = vld [vmem:[%s1936_s5] ss:$0 sm:$0xff] }
 0xf01   :  { %v1506_v8 = vpop.eup %1505 }
 0xf02   :  { %v792_v0 = vmul.f32 %v1506_v8, %v697_v43 }
 0xf65   :  { %v795_v56 = vpop.permute.xlu0 %794 }
 0xf66   :  { %v797_v1 = vmul.f32 %v1506_v8, %v795_v56 }
 0xf68   :  { %799 = vrot.lane.b32.xlu1 %v797_v1, %s1669_s3 }
 0xfda   :  { %v800_v12 = vpop.permute.xlu1 %799 }
 0xfdb   :  { %v802_v57 = vadd.f32 %v800_v12, %v792_v0 }
 0xfdd   :  { %1507 = vtanh.f32 %v802_v57 }
 0xfe7   :  { %v1508_v58 = vpop.eup %1507 }
 0xfe8   :  { %805 = vrot.lane.b32.xlu0 %v1508_v58, %s1668_s11 }
0x105a   :  { %v806_v59 = vpop.permute.xlu0 %805 }
0x105b   :  { %v808_v60 = vmul.f32 %v1506_v8, %v806_v59  ;;  %v1074_v59 = vld [vmem:[#allocation10] sm:$0xff] }
0x105d   :  { %810 = vrot.lane.b32.xlu1 %v808_v60, %s1669_s3  ;;  %v1075_v60 = vld [vmem:[#allocation10 + $0x8] sm:$0xff] }
0x10cf   :  { %v811_v61 = vpop.permute.xlu1 %810 }
0x10d0   :  { %814 = vst.msk [vmem:[#allocation3 + $0xa] sm:$0x3] %vm288_vm2, %v811_v61  ;;  %1365 = vmatmul.mubr.msk.f32.vlgmr.msra.gmra.mrb[6].mxu1 %vm185_vm3, %v811_v61  ;;  %v1441_v61 = vpack.c.bf16 %v1075_v60, %v1074_v59 }
0x10d2   :  { %1442 = vmatprep.subr.bf16.mxu1 %v1441_v61 }
0x10d3   :  { %1444 = vmatpush3.bf16.msra.mxu1 %v1441_v61 }
0x11a3   :  { %v885_v63 = vpop.f32.mrb[6].mxu1 }
0x11a4   :  { %v889_v2 = vadd.f32 %v885_v63, %v816_v62  ;;  %v1366_v3 = vpop.f32.mrb[7].mxu1  ;;  %v1076_v62 = vld [vmem:[#allocation10 + $0x10] sm:$0xff]  ;;  %v1077_v63 = vld [vmem:[#allocation10 + $0x18] sm:$0xff] }
0x11a6   :  { %1509 = vtanh.f32 %v889_v2  ;;  %v1225_v5 = vmul.f32 -1.442695, %v889_v2  ;;  %v1445_v2 = vpack.c.bf16 %v1077_v63, %v1076_v62 }
0x11a8   :  { %1511 = vpow2.f32 %v1225_v5  ;;  %1446 = vmatprep.subr.bf16.mxu1 %v1445_v2 }
0x11a9   :  { %1448 = vmatpush3.bf16.msra.mxu1 %v1445_v2 }
0x11b0   :  { %v1510_v4 = vpop.eup %1509 }
0x11b1   :  { %899 = vrot.lane.b32.xlu0 %v1510_v4, %s1668_s11 }
0x11b2   :  { %v1512_v6 = vpop.eup %1511 }
0x11b3   :  { %v893_v7 = vadd.f32 1.0, %v1512_v6 }
0x11b5   :  { %1513 = vrcp.f32 %v893_v7 }
0x11bf   :  { %v1514_v9 = vpop.eup %1513 }
0x11c0   :  { %v897_v13 = vmul.f32 %v1514_v9, %v802_v57 }
0x1223   :  { %v900_v10 = vpop.permute.xlu0 %899 }
0x1224   :  { %v902_v11 = vmul.f32 %v1514_v9, %v900_v10 }
0x1226   :  { %904 = vrot.lane.b32.xlu1 %v902_v11, %s1669_s3  ;;  %v1230_v11 = vld [vmem:[%s1938_s7] ss:$0 sm:$0xff]  ;;  %s1670_s7 = smov [#allocation12]  }
0x1227   :  { %s1196_s16 = sshll.u32 %s1670_s7, 4  ;;  %s1197_s16 = int_to_ptr.vmem [resolvable:$true] %s1196_s16 }
0x1228   :  { %s1629_s19 = scalar_lea.vmem %s1197_s16, 256  ;;  %p1634_p5 = scmp.lt.s32.totalorder %s1197_s16, %s1197_s16 }
0x1229   :  { %p1630_p4 = scmp.ne.s32.totalorder %s1197_s16, %s1629_s19  ;;  %p1635_p6 = scmp.lt.s32.totalorder %s1629_s19, %s1629_s19 }
0x122b   :  { %p1636_p7 = por %p1635_p6, %p1634_p5 }
0x122d   :  { %p1637_p8 = pnand %p1636_p7, %p1630_p4 }
0x1298   :  { %v905_v14 = vpop.permute.xlu1 %904 }
0x1299   :  { %v907_v15 = vadd.f32 %v905_v14, %v897_v13 }
0x129b   :  { %1515 = vtanh.f32 %v907_v15 }
0x12a5   :  { %v1516_v16 = vpop.eup %1515 }
0x12a6   :  { %910 = vrot.lane.b32.xlu0 %v1516_v16, %s1668_s11 }
0x1318   :  { %v911_v17 = vpop.permute.xlu0 %910 }
0x1319   :  { %v913_v18 = vmul.f32 %v1514_v9, %v911_v17 }
0x131b   :  { %915 = vrot.lane.b32.xlu1 %v913_v18, %s1669_s3 }
0x138d   :  { %v916_v19 = vpop.permute.xlu1 %915 }
0x138e   :  { %919 = vst.msk [vmem:[#allocation3 + $0xc] sm:$0x3] %vm288_vm2, %v916_v19  ;;  %1376 = vmatmul.mubr.msk.f32.vlgmr.msra.gmra.mrb[8].mxu0 %vm185_vm3, %v916_v19 }
0x1461   :  { %v990_v21 = vpop.f32.mrb[8].mxu0 }
0x1462   :  { %v994_v22 = vadd.f32 %v990_v21, %v921_v20  ;;  %v1377_v23 = vpop.f32.mrb[9].mxu0 }
0x1464   :  { %1517 = vtanh.f32 %v994_v22  ;;  %v1227_v25 = vmul.f32 -1.442695, %v994_v22 }
0x1466   :  { %1519 = vpow2.f32 %v1227_v25 }
0x146e   :  { %v1518_v24 = vpop.eup %1517 }
0x146f   :  { %1004 = vrot.lane.b32.xlu0 %v1518_v24, %s1668_s11 }
0x1470   :  { %v1520_v26 = vpop.eup %1519 }
0x1471   :  { %v998_v27 = vadd.f32 1.0, %v1520_v26 }
0x1473   :  { %1521 = vrcp.f32 %v998_v27 }
0x147d   :  { %v1522_v28 = vpop.eup %1521 }
0x147e   :  { %v1002_v31 = vmul.f32 %v1522_v28, %v907_v15 }
0x14e1   :  { %v1005_v29 = vpop.permute.xlu0 %1004 }
0x14e2   :  { %v1007_v30 = vmul.f32 %v1522_v28, %v1005_v29 }
0x14e4   :  { %1009 = vrot.lane.b32.xlu1 %v1007_v30, %s1669_s3 }
0x1556   :  { %v1010_v32 = vpop.permute.xlu1 %1009 }
0x1557   :  { %v1012_v33 = vadd.f32 %v1010_v32, %v1002_v31 }
0x1559   :  { %1523 = vtanh.f32 %v1012_v33 }
0x155a   :  { %1525 = vtanh.f32 %v1025_v35 }
0x1563   :  { %v1524_v34 = vpop.eup %1523 }
0x1564   :  { %1015 = vrot.lane.b32.xlu0 %v1524_v34, %s1668_s11  ;;  %v1526_v36 = vpop.eup %1525 }
0x1565   :  { %v1029_v37 = vsel %vm185_vm3, %v1526_v36, 0.0 }
0x1583   :  { %1030 = vadd.xlane.f32.xlu0 %v1029_v37 }
0x15d6   :  { %v1016_v38 = vpop.permute.xlu0 %1015 }
0x15d7   :  { %v1018_v39 = vmul.f32 %v1522_v28, %v1016_v38 }
0x15d9   :  { %1020 = vrot.lane.b32.xlu1 %v1018_v39, %s1669_s3 }
0x1610   :  { %v1031_v40 = vpop.xlane.xlu0 %1030 }
0x1611   :  { %v1036_v41 = vmul.f32 0.03125, %v1031_v40 }
0x1613   :  { %v1038_v42 = vsub.f32 %v1526_v36, %v1036_v41 }
0x1615   :  { %v1040_v43 = vmul.f32 %v1038_v42, %v1038_v42 }
0x1617   :  { %v1042_v44 = vsel %vm185_vm3, %v1040_v43, 0.0 }
0x1618   :  { %1043 = vadd.xlane.f32.xlu0 %v1042_v44 }
0x164b   :  { %v1021_v45 = vpop.permute.xlu1 %1020 }
0x164c   :  { %1024 = vst.msk [vmem:[#allocation3 + $0xe] sm:$0x3] %vm288_vm2, %v1021_v45 }
0x1653   :  { %v1026_v46 = vld [vmem:[#allocation3 + $0x8] sm:$0xff] }
0x1654   :  { %1527 = vtanh.f32 %v1026_v46 }
0x165e   :  { %v1528_v47 = vpop.eup %1527 }
0x165f   :  { %v1032_v48 = vsel %vm185_vm3, %v1528_v47, 0.0 }
0x1660   :  { %1033 = vadd.xlane.f32.xlu1 %v1032_v48 }
0x16a5   :  { %v1044_v49 = vpop.xlane.xlu0 %1043 }
0x16a6   :  { %v1048_v50 = vmul.f32 0.03125, %v1044_v49 }
0x16a8   :  { %v1050_v51 = vadd.f32 1e-05, %v1048_v50 }
0x16aa   :  { %1529 = vrsqrt.f32 %v1050_v51 }
0x16b4   :  { %v1530_v52 = vpop.eup %1529 }
0x16b5   :  { %v1054_v54 = vmul.f32 %v1530_v52, %v1038_v42 }
0x16b7   :  { %v1063_v8 = vmul.f32 %v1228_v53, %v1054_v54 }
0x16b9   :  { %v1072_v56 = vadd.f32 %v1229_v55, %v1063_v8 }
0x16bb   :  { %1386 = vmatprep.mubr.msk.f32.mxu1 %vm185_vm3, %v1072_v56 }
0x16ed   :  { %v1034_v1 = vpop.xlane.xlu1 %1033 }
0x16ee   :  { %v1037_v0 = vmul.f32 0.03125, %v1034_v1 }
0x16f0   :  { %v1039_v12 = vsub.f32 %v1528_v47, %v1037_v0 }
0x16f2   :  { %v1041_v57 = vmul.f32 %v1039_v12, %v1039_v12 }
0x16f4   :  { %v1045_v58 = vsel %vm185_vm3, %v1041_v57, 0.0 }
0x16f5   :  { %1046 = vadd.xlane.f32.xlu0 %v1045_v58 }
0x1782   :  { %v1047_v3 = vpop.xlane.xlu0 %1046 }
0x1783   :  { %v1049_v4 = vmul.f32 0.03125, %v1047_v3 }
0x1785   :  { %v1051_v5 = vadd.f32 1e-05, %v1049_v4 }
0x1787   :  { %1531 = vrsqrt.f32 %v1051_v5 }
0x1791   :  { %v1532_v6 = vpop.eup %1531 }
0x1792   :  { %v1055_v7 = vmul.f32 %v1532_v6, %v1039_v12 }
0x1794   :  { %v1064_v9 = vmul.f32 %v1228_v53, %v1055_v7 }
0x1796   :  { %v1073_v10 = vadd.f32 %v1229_v55, %v1064_v9 }
0x1798   :  { %1387 = vmatmul.mubr.msk.f32.vlgmr.msra.gmra.mrb[8].mxu1 %vm185_vm3, %v1073_v10 }
0x186b   :  { %v1388_v13 = vpop.f32.mrb[8].mxu1 }
0x186c   :  { %v1163_v14 = vadd.f32 %v1388_v13, %v1230_v11  ;;  %v1157_v15 = vpop.f32.mrb[9].mxu1 }
0x186d   :  { %v1158_v16 = vadd.f32 %v1230_v11, %v1157_v15 }
0x186e   :  { %v1170_v17 = vsel %vm1166_vm4, %v1163_v14, -inf }
0x186f   :  { %1171 = vmax.xlane.f32.xlu0 %v1170_v17  ;;  %v1167_v18 = vsel %vm1166_vm4, %v1158_v16, -inf }
0x1870   :  { %1168 = vmax.xlane.f32.xlu1 %v1167_v18 }
0x18fc   :  { %v1172_v19 = vpop.xlane.xlu0 %1171 }
0x18fd   :  { %v1174_v20 = vsub.f32 %v1163_v14, %v1172_v19  ;;  %v1169_v21 = vpop.xlane.xlu1 %1168 }
0x18fe   :  { %v1173_v22 = vsub.f32 %v1158_v16, %v1169_v21 }
0x18ff   :  { %v1177_v23 = vmul.f32 1.442695, %v1174_v20 }
0x1900   :  { %v1175_v24 = vmul.f32 1.442695, %v1173_v22 }
0x1901   :  { %1533 = vpow2.f32 %v1177_v23 }
0x1902   :  { %1535 = vpow2.f32 %v1175_v24 }
0x190b   :  { %v1534_v25 = vpop.eup %1533 }
0x190c   :  { %v1536_v26 = vpop.eup %1535  ;;  %v1182_v27 = vsel %vm1166_vm4, %v1534_v25, 0.0 }
0x190d   :  { %1183 = vadd.xlane.f32.xlu0 %v1182_v27  ;;  %v1179_v28 = vsel %vm1166_vm4, %v1536_v26, 0.0 }
0x190e   :  { %1180 = vadd.xlane.f32.xlu1 %v1179_v28 }
0x199a   :  { %v1184_v29 = vpop.xlane.xlu0 %1183 }
0x199b   :  { %1537 = vrcp.f32 %v1184_v29  ;;  %v1181_v30 = vpop.xlane.xlu1 %1180 }
0x199c   :  { %1539 = vrcp.f32 %v1181_v30 }
0x19a5   :  { %v1538_v31 = vpop.eup %1537 }
0x19a6   :  { %v1540_v32 = vpop.eup %1539  ;;  %v1188_v33 = vmul.f32 %v1538_v31, %v1534_v25 }
0x19a7   :  { %v1186_v34 = vmul.f32 %v1540_v32, %v1536_v26 }
0x19a8   :  { %1190 = vst.msk [vmem:[#allocation12 + $0x8] sm:$0xff] %vm1166_vm4, %v1188_v33 }
0x19a9   :  { %1189 = vst.msk [vmem:[#allocation12] sm:$0xff] %vm1166_vm4, %v1186_v34 }
0x19aa   :  { %1640 = shalt.err (!%p1637_p8)
}
0x19ab   :  { %s1641_s0 = scalar_lea.hbm %s1939_s8, 256 }
0x19ac   :  { %p1642_p9 = scmp.ne.s32.totalorder %s1939_s8, %s1641_s0  ;;  %p1645_p10 = scmp.lt.u32.totalorder %s1641_s0, %s1939_s8 }
0x19ae   :  { %p1647_p11 = pnand %p1645_p10, %p1642_p9 }
0x19b0   :  { %1650 = shalt.err (!%p1647_p11)
}
0x19b1   :  { %1202 = dma.vmem_to_hbm [thread:$0]  %s1197_s16, 256, %s1939_s8, [#allocation6], %s1661_s17, %s1661_s17, %s1662_s18  }
0x19b2   :  { %1657 = dma.done.wait [#allocation6], 256  }
0x19b3   :  { %1658 = vsyncadd [#allocation6], 4294967040 }
0x19b4   :  { %1206 = vsyncpa [#allocation5], 1 }
0x19b5   :  { %1207 = vsyncpa [#allocation8], 1 }
0x19b6   :  { %1208 = vsyncpa [#allocation11], 1 }
0x19b7   :  { %1209 = vsyncpa [#allocation6], 1 }

</bundles_post_ra>
